<compile_context>
chip_gen: v5e
topology: v5e:2x2
jax: 0.10.0
libtpu: 0.0.40
codegen_flags: <defaults>
</compile_context>

<pallas_src>
import jax
import jax.numpy as jnp
from jax.experimental import pallas as pl
from jax.experimental.pallas import tpu as pltpu
from jax.scipy.linalg import block_diag

_LANE = 128


def _round_up(n, m):
    return ((n + m - 1) // m) * m


def _autoencoder_kernel(x_ref,
                        w1_ref, b1_ref,     # encoder L1 (block-diag if packed)
                        w23_ref, b23_ref,   # folded bottleneck
                        w4_ref, b4_ref,     # decoder L2
                        out_ref):
    x = x_ref[...]                                           # bf16 (or f32)

    # encoder layer 1 + ReLU (f32 accumulate, f32 bias/ReLU)
    h1 = jnp.dot(x, w1_ref[...], preferred_element_type=jnp.float32) + b1_ref[...]
    h1 = jnp.maximum(h1, 0.0)

    # folded (encoder L2 -> decoder L1) + ReLU
    h2 = jnp.dot(h1.astype(w23_ref.dtype), w23_ref[...],
                 preferred_element_type=jnp.float32) + b23_ref[...]
    h2 = jnp.maximum(h2, 0.0)

    # decoder layer 2 (lane-dense output when packed)
    y = jnp.dot(h2.astype(w4_ref.dtype), w4_ref[...],
                preferred_element_type=jnp.float32) + b4_ref[...]
    out_ref[...] = y.astype(out_ref.dtype)


def prepare_params(params, *, io_dtype=jnp.bfloat16):
    """One-time parameter prep: bottleneck fold, sample-packing block-diag
    weights (when D divides 128), bf16 cast of weights.  Call once, reuse."""
    w1, b1 = params["w1"], params["b1"]   # (D, 128), (1, 128)
    w2, b2 = params["w2"], params["b2"]   # (128, Z), (1, Z)
    w3, b3 = params["w3"], params["b3"]   # (Z, 128), (1, 128)
    w4, b4 = params["w4"], params["b4"]   # (128, D), (1, D)
    D = w1.shape[0]

    # fold the linear bottleneck with full precision (reused every forward)
    hi = jax.lax.Precision.HIGHEST
    w23 = jnp.dot(w2, w3, precision=hi)            # (128, 128)
    b23 = jnp.dot(b2, w3, precision=hi) + b3       # (1, 128)

    # sample packing factor: P samples per 128-lane row when D divides 128
    if D % _LANE == 0:
        pack = 1
    elif _LANE % D == 0:
        pack = _LANE // D
    else:
        pack = 1   # fallback: full-dim (unpadded) blocks, masked stores

    if pack > 1:
        w1 = block_diag(*([w1] * pack))            # (P*D, P*128)
        w23 = block_diag(*([w23] * pack))          # (P*128, P*128)
        w4 = block_diag(*([w4] * pack))            # (P*128, P*D)
        b1 = jnp.tile(b1, (1, pack))
        b23 = jnp.tile(b23, (1, pack))
        b4 = jnp.tile(b4, (1, pack))

    prepped = {
        "w1": w1.astype(io_dtype), "b1": b1.astype(jnp.float32),
        "w23": w23.astype(io_dtype), "b23": b23.astype(jnp.float32),
        "w4": w4.astype(io_dtype), "b4": b4.astype(jnp.float32),
    }
    meta = {"input_dim": D, "pack": pack, "io_dtype": io_dtype}
    return prepped, meta


def autoencoder_forward(x, prepped, meta, *, max_batch_tile=1024, min_grid_steps=8):
    """x: (B, input_dim).  Returns (B, input_dim) in meta['io_dtype']."""
    D, pack, io_dtype = meta["input_dim"], meta["pack"], meta["io_dtype"]
    B = x.shape[0]
    assert x.shape[1] == D

    w1, b1 = prepped["w1"], prepped["b1"]
    w23, b23 = prepped["w23"], prepped["b23"]
    w4, b4 = prepped["w4"], prepped["b4"]
    Dr = w1.shape[0]        # packed row width (pack*D)
    Hp = b1.shape[1]        # packed hidden width (pack*128)

    # bf16 I/O: in a fused pipeline activations would already live in bf16
    x = x.astype(io_dtype)

    if pack > 1:
        rem = B % pack
        if rem:
            x = jnp.pad(x, ((0, pack - rem), (0, 0)))   # rare: at most pack-1 rows
        x2 = x.reshape(-1, Dr)                           # free contiguous view
    else:
        x2 = x
    rows = x2.shape[0]

    itemsize = jnp.dtype(io_dtype).itemsize
    # tile sizing: >= min_grid_steps grid steps when possible, <= max_batch_tile,
    # and double-buffered in+out tiles within ~32 MiB (safe on v7x's 64 MiB VMEM)
    vmem_tile_budget = 32 * 1024 * 1024
    cap_by_vmem = max(8, (vmem_tile_budget // (4 * Dr * itemsize)) // 8 * 8)
    tile = min(max_batch_tile, cap_by_vmem,
               _round_up(pl.cdiv(rows, min_grid_steps), 8))
    tile = max(8, _round_up(tile, 8))
    grid = (pl.cdiv(rows, tile),)       # ragged last tile handled by masked writes

    def const2(a):
        return pl.BlockSpec(a.shape, lambda i: (0, 0))

    flops = 2 * rows * (Dr * Hp + Hp * Hp + Hp * Dr)
    bytes_accessed = 2 * rows * Dr * itemsize + sum(
        int(a.size) * a.dtype.itemsize for a in (w1, b1, w23, b23, w4, b4))

    out = pl.pallas_call(
        _autoencoder_kernel,
        out_shape=jax.ShapeDtypeStruct((rows, Dr), io_dtype),
        grid_spec=pltpu.PrefetchScalarGridSpec(
            num_scalar_prefetch=0,
            grid=grid,
            in_specs=[
                pl.BlockSpec((tile, Dr), lambda i: (i, 0)),   # x tile
                const2(w1), const2(b1),
                const2(w23), const2(b23),
                const2(w4), const2(b4),
            ],
            out_specs=pl.BlockSpec((tile, Dr), lambda i: (i, 0)),
        ),
        compiler_params=pltpu.CompilerParams(
            dimension_semantics=("parallel",),
            vmem_limit_bytes=48 * 1024 * 1024,
        ),
        cost_estimate=pl.CostEstimate(
            flops=flops, transcendentals=0, bytes_accessed=bytes_accessed),
    )(x2, w1, b1, w23, b23, w4, b4)

    if pack > 1:
        out = out.reshape(rows * pack, D)
    if out.shape[0] != B:
        out = out[:B]
    return out


def init_params(key, input_dim, output_dim, hidden=128):
    """Deterministic synthetic init (PyTorch-Linear-like uniform fan-in scaling).
    Weights stored as (in_features, out_features) so the kernel does x @ W + b."""
    def linear(key, fan_in, fan_out):
        kw, kb = jax.random.split(key)
        bound = 1.0 / jnp.sqrt(fan_in)
        w = jax.random.uniform(kw, (fan_in, fan_out), jnp.float32, -bound, bound)
        b = jax.random.uniform(kb, (1, fan_out), jnp.float32, -bound, bound)
        return w, b

    k1, k2, k3, k4 = jax.random.split(key, 4)
    w1, b1 = linear(k1, input_dim, hidden)     # encoder[0]
    w2, b2 = linear(k2, hidden, output_dim)    # encoder[2]
    w3, b3 = linear(k3, output_dim, hidden)    # decoder[0]
    w4, b4 = linear(k4, hidden, input_dim)     # decoder[2]
    return {"w1": w1, "b1": b1, "w2": w2, "b2": b2,
            "w3": w3, "b3": b3, "w4": w4, "b4": b4}


def reference_forward(x, p):
    """Pure-JAX f32 reference of the original (unfolded) module forward."""
    h = jnp.maximum(x @ p["w1"] + p["b1"], 0.0)
    z = h @ p["w2"] + p["b2"]
    h2 = jnp.maximum(z @ p["w3"] + p["b3"], 0.0)
    return h2 @ p["w4"] + p["b4"]


if __name__ == "__main__":
    key = jax.random.PRNGKey(0)
    k_x, k_p = jax.random.split(key)

    input_dim = 64    # flattened feature vector (packs 2 samples per 128-lane row)
    output_dim = 8    # bottleneck dimension
    batch = 512       # -> 256 packed rows -> 8 grid steps of 32 rows

    x = jax.random.normal(k_x, (batch, input_dim), jnp.float32)
    params = init_params(k_p, input_dim, output_dim)

    prepped, meta = prepare_params(params)            # one-time param prep
    out = autoencoder_forward(x, prepped, meta)
    out = jax.block_until_ready(out)

    ref = reference_forward(x, params)
    assert out.shape == (batch, input_dim)
    # bf16 I/O + folded bottleneck changes rounding at the ~1e-3..1e-2 level
    err = float(jnp.max(jnp.abs(out.astype(jnp.float32) - ref)))
    assert err < 5e-2, f"mismatch vs pure-JAX reference: max abs err {err}"

    print("KERNEL_OK")
</pallas_src>

<mosaic_0001>
module attributes {stable_mosaic.version = 11 : i64} {
  func.func @_autoencoder_kernel(%arg0: i32, %arg1: memref<32x128xbf16, #tpu.memory_space<vmem>>, %arg2: memref<128x256xbf16, #tpu.memory_space<vmem>>, %arg3: memref<1x256xf32, #tpu.memory_space<vmem>>, %arg4: memref<256x256xbf16, #tpu.memory_space<vmem>>, %arg5: memref<1x256xf32, #tpu.memory_space<vmem>>, %arg6: memref<256x128xbf16, #tpu.memory_space<vmem>>, %arg7: memref<1x128xf32, #tpu.memory_space<vmem>>, %arg8: memref<32x128xbf16, #tpu.memory_space<vmem>>) attributes {dimension_semantics = [#tpu.dimension_semantics<parallel>], iteration_bounds = array<i64: 8>, scalar_prefetch = 0 : i64, scratch_operands = 0 : i64, tpu.core_type = #tpu.core_type<tc>, window_params = [{transform_indices = @transform_0, window_bounds = array<i64: 32, 128>}, {pipeline_mode = #tpu.pipeline_mode<synchronous>, transform_indices = @transform_1, window_bounds = array<i64: 128, 256>}, {pipeline_mode = #tpu.pipeline_mode<synchronous>, transform_indices = @transform_2, window_bounds = array<i64: 1, 256>}, {pipeline_mode = #tpu.pipeline_mode<synchronous>, transform_indices = @transform_3, window_bounds = array<i64: 256, 256>}, {pipeline_mode = #tpu.pipeline_mode<synchronous>, transform_indices = @transform_4, window_bounds = array<i64: 1, 256>}, {pipeline_mode = #tpu.pipeline_mode<synchronous>, transform_indices = @transform_5, window_bounds = array<i64: 256, 128>}, {pipeline_mode = #tpu.pipeline_mode<synchronous>, transform_indices = @transform_6, window_bounds = array<i64: 1, 128>}, {transform_indices = @transform_7, window_bounds = array<i64: 32, 128>}]} {
    %c0 = arith.constant 0 : index
    %c0_0 = arith.constant 0 : index
    %0 = vector.load %arg1[%c0, %c0_0] : memref<32x128xbf16, #tpu.memory_space<vmem>>, vector<32x128xbf16>
    %c0_1 = arith.constant 0 : index
    %c0_2 = arith.constant 0 : index
    %1 = vector.load %arg2[%c0_1, %c0_2] : memref<128x256xbf16, #tpu.memory_space<vmem>>, vector<128x256xbf16>
    %cst = arith.constant dense<0.000000e+00> : vector<32x256xf32>
    %2 = tpu.matmul %0, %1, %cst {dimension_numbers = #tpu.dot_dimension_numbers<[1], [0], [0], [1], [0, 0, 1, 1], [], []>} : vector<32x128xbf16>, vector<128x256xbf16>, vector<32x256xf32> -> vector<32x256xf32>
    %c0_3 = arith.constant 0 : index
    %c0_4 = arith.constant 0 : index
    %3 = vector.load %arg3[%c0_3, %c0_4] : memref<1x256xf32, #tpu.memory_space<vmem>>, vector<1x256xf32>
    %4 = vector.broadcast %3 : vector<1x256xf32> to vector<32x256xf32>
    %5 = arith.addf %2, %4 : vector<32x256xf32>
    %cst_5 = arith.constant 0.000000e+00 : f32
    %6 = vector.broadcast %cst_5 : f32 to vector<32x256xf32>
    %7 = arith.maximumf %5, %6 : vector<32x256xf32>
    %8 = arith.truncf %7 : vector<32x256xf32> to vector<32x256xbf16>
    %c0_6 = arith.constant 0 : index
    %c0_7 = arith.constant 0 : index
    %9 = vector.load %arg4[%c0_6, %c0_7] : memref<256x256xbf16, #tpu.memory_space<vmem>>, vector<256x256xbf16>
    %cst_8 = arith.constant dense<0.000000e+00> : vector<32x256xf32>
    %10 = tpu.matmul %8, %9, %cst_8 {dimension_numbers = #tpu.dot_dimension_numbers<[1], [0], [0], [1], [0, 0, 1, 1], [], []>} : vector<32x256xbf16>, vector<256x256xbf16>, vector<32x256xf32> -> vector<32x256xf32>
    %c0_9 = arith.constant 0 : index
    %c0_10 = arith.constant 0 : index
    %11 = vector.load %arg5[%c0_9, %c0_10] : memref<1x256xf32, #tpu.memory_space<vmem>>, vector<1x256xf32>
    %12 = vector.broadcast %11 : vector<1x256xf32> to vector<32x256xf32>
    %13 = arith.addf %10, %12 : vector<32x256xf32>
    %cst_11 = arith.constant 0.000000e+00 : f32
    %14 = vector.broadcast %cst_11 : f32 to vector<32x256xf32>
    %15 = arith.maximumf %13, %14 : vector<32x256xf32>
    %16 = arith.truncf %15 : vector<32x256xf32> to vector<32x256xbf16>
    %c0_12 = arith.constant 0 : index
    %c0_13 = arith.constant 0 : index
    %17 = vector.load %arg6[%c0_12, %c0_13] : memref<256x128xbf16, #tpu.memory_space<vmem>>, vector<256x128xbf16>
    %cst_14 = arith.constant dense<0.000000e+00> : vector<32x128xf32>
    %18 = tpu.matmul %16, %17, %cst_14 {dimension_numbers = #tpu.dot_dimension_numbers<[1], [0], [0], [1], [0, 0, 1, 1], [], []>} : vector<32x256xbf16>, vector<256x128xbf16>, vector<32x128xf32> -> vector<32x128xf32>
    %c0_15 = arith.constant 0 : index
    %c0_16 = arith.constant 0 : index
    %19 = vector.load %arg7[%c0_15, %c0_16] : memref<1x128xf32, #tpu.memory_space<vmem>>, vector<1x128xf32>
    %20 = vector.broadcast %19 : vector<1x128xf32> to vector<32x128xf32>
    %21 = arith.addf %18, %20 : vector<32x128xf32>
    %22 = arith.truncf %21 : vector<32x128xf32> to vector<32x128xbf16>
    %c0_17 = arith.constant 0 : index
    %c0_18 = arith.constant 0 : index
    %23 = vector.load %arg8[%c0_17, %c0_18] : memref<32x128xbf16, #tpu.memory_space<vmem>>, vector<32x128xbf16>
    tpu.vector_store %arg8[%c0_17, %c0_18], %22 {strides = array<i32>} : memref<32x128xbf16, #tpu.memory_space<vmem>>, vector<32x128xbf16>,
    return
  }
  func.func @transform_0(%arg0: i32) -> (i32, i32) {
    %c0_i32 = arith.constant 0 : i32
    %c0_i32_0 = arith.constant 0 : i32
    return %arg0, %c0_i32 : i32, i32
  }
  func.func @transform_1(%arg0: i32) -> (i32, i32) {
    %c0_i32 = arith.constant 0 : i32
    %c0_i32_0 = arith.constant 0 : i32
    %c0_i32_1 = arith.constant 0 : i32
    return %c0_i32, %c0_i32_0 : i32, i32
  }
  func.func @transform_2(%arg0: i32) -> (i32, i32) {
    %c0_i32 = arith.constant 0 : i32
    %c0_i32_0 = arith.constant 0 : i32
    %c0_i32_1 = arith.constant 0 : i32
    return %c0_i32, %c0_i32_0 : i32, i32
  }
  func.func @transform_3(%arg0: i32) -> (i32, i32) {
    %c0_i32 = arith.constant 0 : i32
    %c0_i32_0 = arith.constant 0 : i32
    %c0_i32_1 = arith.constant 0 : i32
    return %c0_i32, %c0_i32_0 : i32, i32
  }
  func.func @transform_4(%arg0: i32) -> (i32, i32) {
    %c0_i32 = arith.constant 0 : i32
    %c0_i32_0 = arith.constant 0 : i32
    %c0_i32_1 = arith.constant 0 : i32
    return %c0_i32, %c0_i32_0 : i32, i32
  }
  func.func @transform_5(%arg0: i32) -> (i32, i32) {
    %c0_i32 = arith.constant 0 : i32
    %c0_i32_0 = arith.constant 0 : i32
    %c0_i32_1 = arith.constant 0 : i32
    return %c0_i32, %c0_i32_0 : i32, i32
  }
  func.func @transform_6(%arg0: i32) -> (i32, i32) {
    %c0_i32 = arith.constant 0 : i32
    %c0_i32_0 = arith.constant 0 : i32
    %c0_i32_1 = arith.constant 0 : i32
    return %c0_i32, %c0_i32_0 : i32, i32
  }
  func.func @transform_7(%arg0: i32) -> (i32, i32) {
    %c0_i32 = arith.constant 0 : i32
    %c0_i32_0 = arith.constant 0 : i32
    return %arg0, %c0_i32 : i32, i32
  }
}

</mosaic_0001>

<bundles_post_ra>
// kernel: tpu_custom_call.1
= control target key start
LH: loop header
LB: loop body
LE: loop exit
PB: predicated region body
PF: predicated region fallthrough
CT: control target
= control target key end

     0   :  { %s2040_s0 = inlined_call_operand.hbm [shape: bf16[256,128], index: 0, kind: input, shape index: {}]   ;;  %s2041_s1 = inlined_call_operand.hbm [shape: bf16[128,256], index: 1, kind: input, shape index: {}]   ;;  %s2042_s2 = inlined_call_operand.hbm [shape: f32[1,256], index: 2, kind: input, shape index: {}]   ;;  %s2043_s3 = inlined_call_operand.hbm [shape: bf16[256,256], index: 3, kind: input, shape index: {}]   ;;  %s2044_s4 = inlined_call_operand.vmem [shape: f32[1,256], index: 4, kind: input, shape index: {}]   ;;  %s2045_s5 = inlined_call_operand.hbm [shape: bf16[256,128], index: 5, kind: input, shape index: {}]   ;;  %s2046_s6 = inlined_call_operand.vmem [shape: f32[1,128], index: 6, kind: input, shape index: {}]   ;;  %s2047_s7 = inlined_call_operand.hbm [shape: bf16[256,128], index: 7, kind: output, shape index: {}]  }
   0x1   :  { %2050 = sst [smem:[#allocation16_spill]] %s2041_s1 }
   0x2   :  { %12 = vsyncpa [#allocation3], 0 }
   0x3   :  { %14 = vsyncpa [#allocation3 + $0x1], 0 }
   0x4   :  { %15 = vsyncpa [#allocation6], 0 }
   0x5   :  { %16 = vsyncpa [#allocation9], 0 }
   0x6   :  { %17 = vsyncpa [#allocation4], 0 }
   0x7   :  { %19 = vsyncpa [#allocation4 + $0x1], 0  ;;  %s1859_s24 = smov 0   ;;  %s1861_s25 = smov 0  }
   0x8   :  { %s1863_s26 = smov 0   ;;  %s1865_s27 = smov 0  }
   0x9 LB: > { %s1880_s28 = sadd.s32 4294967295, %s1807_s27   ;;  %s1124_s29 = sadd.s32 4294967294, %s1807_s27   ;;  %s1807_s27 = sphi %s1865_s27, %s2063_s27   ;;  %s1803_s26 = sphi %s1863_s26, %s2062_s26   ;;  %s1799_s25 = sphi %s1861_s25, %s2061_s25   ;;  %s1795_s24 = sphi %s1859_s24, %s2060_s24  }
   0xa   : > { %p45_p0 = scmp.ne.s32.totalorder %s1799_s25, %s1795_s24  ;;  %p46_p1 = scmp.eq.s32.totalorder %s1880_s28, 0 }
   0xb   : > { %p195_p2 = scmp.eq.s32.totalorder %s1880_s28, 7  ;;  %p201_p3 = scmp.eq.s32.totalorder %s1124_s29, 7 }
   0xc   : > { %p1889_p4 = por %p46_p1, %p45_p0  ;;  %p1125_p5 = scmp.ge.s32.totalorder %s1807_s27, 1 }
   0xd   : > { %p1894_p6 = por %p201_p3, %p45_p0  ;;  %p208_p7 = scmp.lt.s32.totalorder %s1807_s27, 9 }
   0xe   : > { %s2053_s1 = sld [smem:[#allocation16_spill]]  ;;  %s1809_s13 = smov [#allocation5]  }
   0xf   : > { %p1902_p8 = pnand %p1125_p5, %p208_p7  ;;  %s221_s14 = sshll.u32 %s1809_s13, 4  ;;  %s222_s14 = int_to_ptr.vmem [resolvable:$true] %s221_s14 }
  0x10   : > { %s245_s18 = sshll.u32 %s2043_s3, 4  ;;  %s1810_s19 = smov 128   ;;  %s246_s18 = int_to_ptr.hbm [resolvable:$true] %s245_s18 }
  0x11   : > { %p1509_p9 = pneg %p1902_p8  ;;  %s1811_s20 = smov 8  }
  0x12   : > { %s1812_s21 = smov [#allocation8]   ;;  %s234_s9 = sshll.u32 %s2042_s2, 4  ;;  %s235_s9 = int_to_ptr.hbm [resolvable:$true] %s234_s9 }
  0x13   : > { %p1910_p10 = pnand %p1509_p9, %p46_p1  ;;  %s247_s22 = sshll.u32 %s1812_s21, 4  ;;  %s248_s22 = int_to_ptr.vmem [resolvable:$true] %s247_s22 }
  0x14   : > { %s219_s11 = sshll.u32 %s2053_s1, 4  ;;  %s262_s16 = sshll.u32 %s2045_s5, 4  ;;  %s220_s11 = int_to_ptr.hbm [resolvable:$true] %s219_s11  ;;  %s263_s16 = int_to_ptr.hbm [resolvable:$true] %s262_s16 }
  0x15   : > { %1512 = dma.hbm_to_vmem [thread:$0]  (!%p1910_p10), %s220_s11, 2048, %s222_s14, [#allocation6], %s1810_s19, %s1810_s19, %s1811_s20  }
  0x16   : > { %1518 = dma.hbm_to_vmem [thread:$0]  (!%p1910_p10), %s246_s18, 4096, %s248_s22, [#allocation9], %s1810_s19, %s1810_s19, %s1811_s20  }
  0x17   : > { %s1813_s11 = smov [#allocation7]   ;;  %s1814_s17 = smov [#allocation10]  }
  0x18   : > { %s236_s14 = sshll.u32 %s1813_s11, 4  ;;  %s264_s18 = sshll.u32 %s1814_s17, 4  ;;  %s237_s14 = int_to_ptr.vmem [resolvable:$true] %s236_s14  ;;  %s265_s18 = int_to_ptr.vmem [resolvable:$true] %s264_s18 }
  0x19   : > { %1515 = dma.hbm_to_vmem [thread:$0]  (!%p1910_p10), %s235_s9, 32, %s237_s14, [#allocation6]  }
  0x1a   : > { %s2048_s19 = smov 64   ;;  %s2049_s20 = smov 4  }
  0x1b   : > { %1521 = dma.hbm_to_vmem [thread:$0]  (!%p1910_p10), %s263_s16, 2048, %s265_s18, [#allocation9], %s2048_s19, %s2048_s19, %s2049_s20  }
  0x1c   : > { %s1935_s21 = sadd.s32 1, %s1807_s27   ;;  %s32_s23 = sadd.s32 1, %s1803_s26 }
  0x1d   : > { %s29_s22 = ssub.s32 %s1807_s27, %s1935_s21  ;;  %p39_p12 = scmp.ne.s32.totalorder %s1803_s26, %s1799_s25 }
  0x1e   : > { %p30_p11 = scmp.eq.s32.totalorder %s29_s22, 0  ;;  %p40_p13 = scmp.eq.s32.totalorder %s1807_s27, 0 }
  0x1f   : > { %p1948_p3 = por %p195_p2, %p39_p12  ;;  %p1534_p5 = scmp.lt.s32.totalorder %s1807_s27, 8 }
  0x20   : > { %s1944_s29 = scalar_select %p30_p11, %s1803_s26, %s32_s23  }
  0x21   : > { %p41_p0 = por %p40_p13, %p39_p12  ;;  %s281_s15 = sand.u32 1, %s1803_s26  }
  0x22   : > { %s1131_s10 = sshll.u32 %s281_s15, 4  ;;  %s1410_s13 = sshll.u32 %s1807_s27, 4 }
  0x23   : > { %s290_s14 = scalar_lea.hbm %s2040_s0, %s1410_s13  ;;  %s285_s17 = scalar_lea.vmem [#allocation2], %s1131_s10 }
  0x24   : > { %s293_s18 = sshll.u32 %s285_s17, 4  ;;  %s291_s22 = sshll.u32 %s290_s14, 4  ;;  %s294_s18 = int_to_ptr.vmem [resolvable:$true] %s293_s18  ;;  %s292_s22 = int_to_ptr.hbm [resolvable:$true] %s291_s22 }
  0x25   : > { %p1958_p7 = pnand %p1534_p5, %p41_p0  ;;  %s282_s19 = scalar_lea.sflag [#allocation3], %s281_s15 }
  0x26   : > { %s1703_s20 = sshra.s32 %s292_s22, 4  ;;  %s1710_s16 = scalar_lea.hbm %s2040_s0, 128  ;;  %s1704_s20 = int_to_ptr.hbm [resolvable:$true] %s1703_s20 }
  0x27   : > { %s1705_s1 = scalar_lea.hbm %s1704_s20, 16  ;;  %p1707_p9 = pneg %p1958_p7 }
  0x28   : > { %p1706_p2 = scmp.ne.s32.totalorder %s1704_s20, %s1705_s1  ;;  %p1711_p12 = scmp.lt.s32.totalorder %s1704_s20, %s2040_s0 }
  0x29   : > { %p1712_p13 = scmp.lt.s32.totalorder %s1710_s16, %s1705_s1 }
  0x2a   : > { %p1708_p10 = pnand %p1707_p9, %p1706_p2 }
  0x2b   : > { %p1713_p0 = por %p1712_p13, %p1711_p12 }
  0x2c   : > { %p1709_p11 = pneg %p1708_p10 }
  0x2e   : > { %p1714_p5 = pnand %p1713_p0, %p1709_p11 }
  0x30   : > { %1717 = shalt.err (!%p1714_p5)
}
  0x31   : > { %s2058_s15 = smov 4   ;;  %s2059_s17 = smov 64  }
  0x32   : > { %1525 = dma.hbm_to_vmem [thread:$0]  (!%p1958_p7), %s292_s22, 256, %s294_s18, %s282_s19, %s2059_s17, %s2059_s17, %s2058_s15  }
  0x33   : > { %305 = sbr.rel (%p1902_p8) target bundleno = 549 (0x225), region = 48  ;;  %s1978_s13 = sand.u32 (!%p1902_p8), 1, %s1799_s25  }
  0x34   : > { %s1135_s1 = sshll.u32 (!%p1902_p8), %s1978_s13, 4  ;;  %s308_s20 = scalar_lea.sflag (!%p1902_p8), [#allocation3], %s1978_s13 }
  0x35   : > { %s1984_s10 = scalar_lea.vmem (!%p1902_p8), [#allocation2], %s1135_s1 }
  0x38   : > { %1778 = dma.done.wait (%p1889_p4), %s308_s20, 256  }
  0x39   : > { %1780 = vsyncadd (%p1889_p4), %s308_s20, 4294967040 }
  0x3a   : > { %1782 = dma.done.wait (%p46_p1), [#allocation6], 2080  }
  0x3b   : > { %1784 = vsyncadd (%p46_p1), [#allocation6], 4294965216 }
  0x3c   : > { %1786 = dma.done.wait (%p46_p1), [#allocation9], 6144  }
  0x3d   : > { %1788 = vsyncadd (%p46_p1), [#allocation9], 4294961152  ;;  %v1207_v0 = vld [vmem:[#allocation5 + $0x70] sm:$0xf]  ;;  %v1428_v1 = vld [vmem:[#allocation5 + $0x74] sm:$0xf0] }
  0x3e   : > { %v1427_v2 = vld [vmem:[#allocation5 + $0x74] sm:$0xf]  ;;  %v1208_v3 = vor.u32 %v1428_v1, %v1207_v0  ;;  %v1209_v4 = vld [vmem:[#allocation5 + $0x78] sm:$0xf0]  ;;  %v1199_v5 = vld [vmem:[#allocation5 + $0x60] sm:$0xf] }
  0x3f   : > { %v1426_v6 = vld [vmem:[#allocation5 + $0x64] sm:$0xf0]  ;;  %v1212_v7 = vor.u32 %v1427_v2, %v1209_v4  ;;  %v1425_v8 = vld [vmem:[#allocation5 + $0x64] sm:$0xf]  ;;  %v1201_v9 = vld [vmem:[#allocation5 + $0x68] sm:$0xf0] }
  0x40   : > { %483 = vmatpush.bf16.msra.mxu0 %v1208_v3  ;;  %v1200_v10 = vor.u32 %v1426_v6, %v1199_v5  ;;  %v1204_v11 = vor.u32 %v1425_v8, %v1201_v9  ;;  %v1191_v12 = vld [vmem:[#allocation5 + $0x50] sm:$0xf]  ;;  %v1424_v13 = vld [vmem:[#allocation5 + $0x54] sm:$0xf0]  ;;  %v1423_v14 = vld [vmem:[#allocation5 + $0x54] sm:$0xf] }
  0x41   : > { %502 = vmatpush.bf16.msra.mxu1 %v1212_v7  ;;  %v1193_v15 = vld [vmem:[#allocation5 + $0x58] sm:$0xf0]  ;;  %v1192_v16 = vor.u32 %v1424_v13, %v1191_v12  ;;  %v1183_v18 = vld [vmem:[#allocation5 + $0x40] sm:$0xf]  ;;  %v1422_v19 = vld [vmem:[#allocation5 + $0x44] sm:$0xf0] }
  0x42   : > { %v1196_v17 = vor.u32 %v1423_v14, %v1193_v15  ;;  %v1421_v20 = vld [vmem:[#allocation5 + $0x44] sm:$0xf]  ;;  %v1185_v21 = vld [vmem:[#allocation5 + $0x48] sm:$0xf0]  ;;  %v1184_v22 = vor.u32 %v1422_v19, %v1183_v18  ;;  %v1175_v24 = vld [vmem:[#allocation5 + $0x30] sm:$0xf] }
  0x43   : > { %v1188_v23 = vor.u32 %v1421_v20, %v1185_v21  ;;  %v1420_v25 = vld [vmem:[#allocation5 + $0x34] sm:$0xf0]  ;;  %v1419_v26 = vld [vmem:[#allocation5 + $0x34] sm:$0xf]  ;;  %v1177_v27 = vld [vmem:[#allocation5 + $0x38] sm:$0xf0] }
  0x44   : > { %484 = vmatpush.bf16.msra.mxu0 %v1200_v10  ;;  %v1176_v28 = vor.u32 %v1420_v25, %v1175_v24  ;;  %v1180_v29 = vor.u32 %v1419_v26, %v1177_v27  ;;  %v1167_v30 = vld [vmem:[#allocation5 + $0x20] sm:$0xf]  ;;  %v1418_v31 = vld [vmem:[#allocation5 + $0x24] sm:$0xf0]  ;;  %v1417_v32 = vld [vmem:[#allocation5 + $0x24] sm:$0xf] }
  0x45   : > { %503 = vmatpush.bf16.msra.mxu1 %v1204_v11  ;;  %v1169_v33 = vld [vmem:[#allocation5 + $0x28] sm:$0xf0]  ;;  %v1168_v34 = vor.u32 %v1418_v31, %v1167_v30  ;;  %v1271_v35 = vld [vmem:[#allocation8 + $0x70] sm:$0xf]  ;;  %v1444_v36 = vld [vmem:[#allocation8 + $0x74] sm:$0xf0] }
  0x46   : > { %v1335_v37 = vld [vmem:[#allocation8 + $0xf0] sm:$0xf]  ;;  %v1172_v38 = vor.u32 %v1417_v32, %v1169_v33  ;;  %v1416_v40 = vld [vmem:[#allocation5 + $0x14] sm:$0xf0]  ;;  %v1272_v41 = vor.u32 %v1444_v36, %v1271_v35  ;;  %v1161_v44 = vld [vmem:[#allocation5 + $0x18] sm:$0xf0] }
  0x47   : > { %v1159_v39 = vld [vmem:[#allocation5 + $0x10] sm:$0xf]  ;;  %v1460_v42 = vld [vmem:[#allocation8 + $0xf4] sm:$0xf0]  ;;  %v1415_v43 = vld [vmem:[#allocation5 + $0x14] sm:$0xf] }
  0x48   : > { %485 = vmatpush.bf16.msra.mxu0 %v1192_v16  ;;  %v1336_v45 = vor.u32 %v1460_v42, %v1335_v37  ;;  %v1263_v46 = vld [vmem:[#allocation8 + $0x60] sm:$0xf]  ;;  %731 = vmatpush.bf16.msra.mxu2 %v1272_v41  ;;  %v1442_v48 = vld [vmem:[#allocation8 + $0x64] sm:$0xf0]  ;;  %v1160_v51 = vor.u32 %v1416_v40, %v1159_v39  ;;  %v1164_v57 = vor.u32 %v1415_v43, %v1161_v44  ;;  %v1443_v58 = vld [vmem:[#allocation8 + $0x74] sm:$0xf] }
  0x49   : > { %504 = vmatpush.bf16.msra.mxu1 %v1196_v17  ;;  %v1151_v47 = vld [vmem:[#allocation5] sm:$0xf]  ;;  %v1458_v50 = vld [vmem:[#allocation8 + $0xe4] sm:$0xf0]  ;;  %v1413_v53 = vld [vmem:[#allocation5 + $0x4] sm:$0xf]  ;;  %v1264_v55 = vor.u32 %v1442_v48, %v1263_v46 }
  0x4a   : > { %v1327_v49 = vld [vmem:[#allocation8 + $0xe0] sm:$0xf]  ;;  %v1414_v52 = vld [vmem:[#allocation5 + $0x4] sm:$0xf0]  ;;  %v1153_v54 = vld [vmem:[#allocation5 + $0x8] sm:$0xf0]  ;;  %750 = vmatpush.bf16.msra.mxu3 %v1336_v45 }
  0x4b   : > { %v1328_v56 = vor.u32 %v1458_v50, %v1327_v49  ;;  %v1255_v59 = vld [vmem:[#allocation8 + $0x50] sm:$0xf]  ;;  %v1440_v60 = vld [vmem:[#allocation8 + $0x54] sm:$0xf0]  ;;  %v1273_v61 = vld [vmem:[#allocation8 + $0x78] sm:$0xf0]  ;;  %v1152_v3 = vor.u32 %v1414_v52, %v1151_v47  ;;  %v1156_v7 = vor.u32 %v1413_v53, %v1153_v54 }
  0x4c   : > { %486 = vmatpush.bf16.msra.mxu0 %v1184_v22  ;;  %v1319_v62 = vld [vmem:[#allocation8 + $0xd0] sm:$0xf]  ;;  %v1456_v63 = vld [vmem:[#allocation8 + $0xd4] sm:$0xf0]  ;;  %v1459_v0 = vld [vmem:[#allocation8 + $0xf4] sm:$0xf]  ;;  %732 = vmatpush.bf16.msra.mxu2 %v1264_v55  ;;  %v1256_v2 = vor.u32 %v1440_v60, %v1255_v59  ;;  %v1276_v8 = vor.u32 %v1443_v58, %v1273_v61 }
  0x4d   : > { %505 = vmatpush.bf16.msra.mxu1 %v1188_v23  ;;  %v1337_v1 = vld [vmem:[#allocation8 + $0xf8] sm:$0xf0]  ;;  %v1320_v4 = vor.u32 %v1456_v63, %v1319_v62  ;;  %v1247_v5 = vld [vmem:[#allocation8 + $0x40] sm:$0xf]  ;;  %v1438_v6 = vld [vmem:[#allocation8 + $0x44] sm:$0xf0] }
  0x4e   : > { %751 = vmatpush.bf16.msra.mxu3 %v1328_v56  ;;  %v1311_v9 = vld [vmem:[#allocation8 + $0xc0] sm:$0xf]  ;;  %v1454_v10 = vld [vmem:[#allocation8 + $0xc4] sm:$0xf0]  ;;  %v1340_v11 = vor.u32 %v1459_v0, %v1337_v1  ;;  %v1441_v12 = vld [vmem:[#allocation8 + $0x64] sm:$0xf]  ;;  %v1248_v17 = vor.u32 %v1438_v6, %v1247_v5 }
  0x4f   : > { %v1265_v13 = vld [vmem:[#allocation8 + $0x68] sm:$0xf0]  ;;  %v1457_v15 = vld [vmem:[#allocation8 + $0xe4] sm:$0xf]  ;;  %v1312_v18 = vor.u32 %v1454_v10, %v1311_v9  ;;  %v1439_v21 = vld [vmem:[#allocation8 + $0x54] sm:$0xf] }
  0x50   : > { %487 = vmatpush.bf16.msra.mxu0 %v1176_v28  ;;  %v1411_v14 = vld [vmem:[%s1984_s10] sm:$0xff]  ;;  %733 = vmatpush.bf16.msra.mxu2 %v1256_v2  ;;  %v1268_v19 = vor.u32 %v1441_v12, %v1265_v13  ;;  %v1412_v33 = vld [vmem:[%s1984_s10 + $0x8] sm:$0xff]  ;;  %s362_s22 = scalar_lea.vmem [#allocation11], %s1135_s1  ;;  %s1477_s23 = sshll.u32 %s1880_s28, 4 }
  0x51   : > { %506 = vmatpush.bf16.msra.mxu1 %v1180_v29  ;;  %v1329_v16 = vld [vmem:[#allocation8 + $0xe8] sm:$0xf0]  ;;  %v1257_v22 = vld [vmem:[#allocation8 + $0x58] sm:$0xf0]  ;;  %v1455_v23 = vld [vmem:[#allocation8 + $0xd4] sm:$0xf]  ;;  %s1009_s14 = scalar_lea.hbm %s2047_s7, %s1477_s23 }
  0x52   : > { %752 = vmatpush.bf16.msra.mxu3 %v1320_v4  ;;  %v1332_v20 = vor.u32 %v1457_v15, %v1329_v16  ;;  %v1321_v24 = vld [vmem:[#allocation8 + $0xd8] sm:$0xf0]  ;;  %v1260_v25 = vor.u32 %v1439_v21, %v1257_v22  ;;  %v1437_v27 = vld [vmem:[#allocation8 + $0x44] sm:$0xf]  ;;  %v1249_v28 = vld [vmem:[#allocation8 + $0x48] sm:$0xf0] }
  0x53   : > { %v1324_v26 = vor.u32 %v1455_v23, %v1321_v24  ;;  %v1453_v29 = vld [vmem:[#allocation8 + $0xc4] sm:$0xf]  ;;  %v1313_v30 = vld [vmem:[#allocation8 + $0xc8] sm:$0xf0]  ;;  %v1252_v31 = vor.u32 %v1437_v27, %v1249_v28  ;;  %v1436_v35 = vld [vmem:[#allocation8 + $0x34] sm:$0xf0] }
  0x54   : > { %488 = vmatpush.bf16.msra.mxu0 %v1168_v34  ;;  %734 = vmatpush.bf16.msra.mxu2 %v1248_v17  ;;  %v1316_v32 = vor.u32 %v1453_v29, %v1313_v30  ;;  %v1239_v34 = vld [vmem:[#allocation8 + $0x30] sm:$0xf]  ;;  %v1435_v39 = vld [vmem:[#allocation8 + $0x34] sm:$0xf]  ;;  %v1241_v40 = vld [vmem:[#allocation8 + $0x38] sm:$0xf0] }
  0x55   : > { %507 = vmatpush.bf16.msra.mxu1 %v1172_v38  ;;  %v1303_v36 = vld [vmem:[#allocation8 + $0xb0] sm:$0xf]  ;;  %v1240_v37 = vor.u32 %v1436_v35, %v1239_v34  ;;  %v1452_v38 = vld [vmem:[#allocation8 + $0xb4] sm:$0xf0]  ;;  %v1244_v42 = vor.u32 %v1435_v39, %v1241_v40  ;;  %v1451_v43 = vld [vmem:[#allocation8 + $0xb4] sm:$0xf] }
  0x56   : > { %753 = vmatpush.bf16.msra.mxu3 %v1312_v18  ;;  %v1304_v41 = vor.u32 %v1452_v38, %v1303_v36  ;;  %v1305_v44 = vld [vmem:[#allocation8 + $0xb8] sm:$0xf0]  ;;  %v1231_v46 = vld [vmem:[#allocation8 + $0x20] sm:$0xf]  ;;  %v1434_v47 = vld [vmem:[#allocation8 + $0x24] sm:$0xf0] }
  0x57   : > { %v1308_v45 = vor.u32 %v1451_v43, %v1305_v44  ;;  %v1232_v48 = vor.u32 %v1434_v47, %v1231_v46  ;;  %v1295_v49 = vld [vmem:[#allocation8 + $0xa0] sm:$0xf]  ;;  %v1450_v50 = vld [vmem:[#allocation8 + $0xa4] sm:$0xf0]  ;;  %v1233_v53 = vld [vmem:[#allocation8 + $0x28] sm:$0xf0] }
  0x58   : > { %489 = vmatpush.bf16.msra.mxu0 %v1160_v51  ;;  %735 = vmatpush.bf16.msra.mxu2 %v1240_v37  ;;  %v1433_v51 = vld [vmem:[#allocation8 + $0x24] sm:$0xf]  ;;  %v1296_v52 = vor.u32 %v1450_v50, %v1295_v49  ;;  %v1297_v55 = vld [vmem:[#allocation8 + $0xa8] sm:$0xf0]  ;;  %v1223_v58 = vld [vmem:[#allocation8 + $0x10] sm:$0xf] }
  0x59   : > { %508 = vmatpush.bf16.msra.mxu1 %v1164_v57  ;;  %v1449_v54 = vld [vmem:[#allocation8 + $0xa4] sm:$0xf]  ;;  %v1236_v56 = vor.u32 %v1433_v51, %v1233_v53  ;;  %v1432_v59 = vld [vmem:[#allocation8 + $0x14] sm:$0xf0]  ;;  %v1287_v60 = vld [vmem:[#allocation8 + $0x90] sm:$0xf] }
  0x5a   : > { %754 = vmatpush.bf16.msra.mxu3 %v1304_v41  ;;  %v1300_v57 = vor.u32 %v1449_v54, %v1297_v55  ;;  %v1224_v61 = vor.u32 %v1432_v59, %v1223_v58  ;;  %v1448_v62 = vld [vmem:[#allocation8 + $0x94] sm:$0xf0]  ;;  %v1431_v63 = vld [vmem:[#allocation8 + $0x14] sm:$0xf]  ;;  %v1225_v0 = vld [vmem:[#allocation8 + $0x18] sm:$0xf0] }
  0x5b   : > { %v1288_v1 = vor.u32 %v1448_v62, %v1287_v60  ;;  %v1228_v2 = vor.u32 %v1431_v63, %v1225_v0  ;;  %v1289_v4 = vld [vmem:[#allocation8 + $0x98] sm:$0xf0]  ;;  %v1215_v6 = vld [vmem:[#allocation8] sm:$0xf]  ;;  %v1446_v10 = vld [vmem:[#allocation8 + $0x84] sm:$0xf0] }
  0x5c   : > { %490 = vmatpush.bf16.msra.mxu0 %v1152_v3  ;;  %736 = vmatpush.bf16.msra.mxu2 %v1232_v48  ;;  %v1447_v3 = vld [vmem:[#allocation8 + $0x94] sm:$0xf]  ;;  %v1217_v12 = vld [vmem:[#allocation8 + $0x8] sm:$0xf0]  ;;  %v1445_v15 = vld [vmem:[#allocation8 + $0x84] sm:$0xf] }
  0x5d   : > { %509 = vmatpush.bf16.msra.mxu1 %v1156_v7  ;;  %v1292_v5 = vor.u32 %v1447_v3, %v1289_v4  ;;  %v1430_v7 = vld [vmem:[#allocation8 + $0x4] sm:$0xf0]  ;;  %v1281_v16 = vld [vmem:[#allocation8 + $0x88] sm:$0xf0]  ;;  %v385_v18 = vld [vmem:[#allocation7] sm:$0x3] }
  0x5e   : > { %755 = vmatpush.bf16.msra.mxu3 %v1296_v52  ;;  %v1216_v9 = vor.u32 %v1430_v7, %v1215_v6  ;;  %v1284_v17 = vor.u32 %v1445_v15, %v1281_v16  ;;  %v1468_v21 = vld [vmem:[#allocation10 + $0x38] sm:$0xff]  ;;  %v1475_v23 = vld [vmem:[#allocation10 + $0x70] sm:$0xff]  ;;  %v1474_v27 = vld [vmem:[#allocation10 + $0x68] sm:$0xff]  ;;  %s1010_s15 = sshll.u32 %s362_s22, 4  ;;  %s1012_s17 = sshll.u32 %s1009_s14, 4  ;;  %s1011_s15 = int_to_ptr.vmem [resolvable:$true] %s1010_s15  ;;  %s1013_s17 = int_to_ptr.hbm [resolvable:$true] %s1012_s17 }
  0x5f   : > { %491 = vmatmul.bf16.vlgmr.msra.gmra.mxu0 %v1411_v14  ;;  %v1467_v24 = vld [vmem:[#allocation10 + $0x30] sm:$0xff]  ;;  %v1466_v28 = vld [vmem:[#allocation10 + $0x28] sm:$0xff]  ;;  %v1473_v35 = vld [vmem:[#allocation10 + $0x60] sm:$0xff]  ;;  %s998_s1 = scalar_lea.sflag [#allocation4], %s1978_s13  ;;  %s1747_s20 = sshra.s32 %s1013_s17, 4  ;;  %s1748_s20 = int_to_ptr.hbm [resolvable:$true] %s1747_s20 }
  0x60   : > { %769 = vmatpush.bf16.msrb.mxu0 %v1276_v8  ;;  %510 = vmatmul.bf16.vlgmr.msra.gmra.mxu1 %v1411_v14  ;;  %v1279_v8 = vld [vmem:[#allocation8 + $0x80] sm:$0xf]  ;;  %v1471_v58 = vld [vmem:[#allocation10 + $0x50] sm:$0xff]  ;;  %v1464_v59 = vld [vmem:[#allocation10 + $0x18] sm:$0xff]  ;;  %s1749_s28 = scalar_lea.hbm %s1748_s20, 16  ;;  %s1753_s12 = scalar_lea.hbm %s2047_s7, 128 }
  0x61   : > { %788 = vmatpush.bf16.msrb.mxu1 %v1340_v11  ;;  %737 = vmatpush.bf16.msra.mxu2 %v1224_v61  ;;  %v1429_v11 = vld [vmem:[#allocation8 + $0x4] sm:$0xf]  ;;  %v1280_v13 = vor.u32 %v1446_v10, %v1279_v8  ;;  %v1470_v60 = vld [vmem:[#allocation10 + $0x48] sm:$0xff]  ;;  %v1463_v61 = vld [vmem:[#allocation10 + $0x10] sm:$0xff]  ;;  %p1750_p1 = scmp.ne.s32.totalorder %s1748_s20, %s1749_s28  ;;  %p1754_p7 = scmp.lt.s32.totalorder %s1748_s20, %s2047_s7 }
  0x62   : > { %756 = vmatpush.bf16.msra.mxu3 %v1288_v1  ;;  %v1220_v14 = vor.u32 %v1429_v11, %v1217_v12  ;;  %v1469_v62 = vld [vmem:[#allocation10 + $0x40] sm:$0xff]  ;;  %v1462_v63 = vld [vmem:[#allocation10 + $0x8] sm:$0xff]  ;;  %v565_v1 = vld [vmem:[%s2044_s4] sm:$0x3]  ;;  %p1755_p2 = scmp.lt.s32.totalorder %s1753_s12, %s1749_s28 }
  0x63   : > { %v1461_v0 = vld [vmem:[#allocation10] sm:$0xff]  ;;  %v568_v3 = vperm.slane %v565_v1, 1  ;;  %v567_v7 = vperm.slane %v565_v1, 0  ;;  %p1751_p4 = pnand %p1750_p1, %p1948_p3 }
  0x64   : > { %770 = vmatpush.bf16.msrb.mxu0 %v1268_v19  ;;  %p1756_p9 = por %p1755_p2, %p1754_p7 }
  0x65   : > { %789 = vmatpush.bf16.msrb.mxu1 %v1332_v20  ;;  %738 = vmatpush.bf16.msra.mxu2 %v1216_v9  ;;  %v1476_v20 = vld [vmem:[#allocation10 + $0x78] sm:$0xff]  ;;  %p1752_p8 = pneg %p1751_p4 }
  0x66   : > { %757 = vmatpush.bf16.msra.mxu3 %v1280_v13 }
  0x67   : > { %p1757_p10 = pnand %p1756_p9, %p1752_p8 }
  0x68   : > { %771 = vmatpush.bf16.msrb.mxu0 %v1260_v25  ;;  %v387_v25 = vperm.slane %v385_v18, 0 }
  0x69   : > { %790 = vmatpush.bf16.msrb.mxu1 %v1324_v26  ;;  %951 = vmatpush.bf16.msrb.mxu2 %v1468_v21  ;;  %v388_v26 = vperm.slane %v385_v18, 1 }
  0x6a   : > { %970 = vmatpush.bf16.msrb.mxu3 %v1476_v20 }
  0x6c   : > { %772 = vmatpush.bf16.msrb.mxu0 %v1252_v31 }
  0x6d   : > { %791 = vmatpush.bf16.msrb.mxu1 %v1316_v32  ;;  %952 = vmatpush.bf16.msrb.mxu2 %v1467_v24 }
  0x6e   : > { %971 = vmatpush.bf16.msrb.mxu3 %v1475_v23 }
  0x6f   : > { %496 = vmatmul.bf16.gmra.mxu0 %v1412_v33 }
  0x70   : > { %515 = vmatmul.bf16.gmra.mxu1 %v1412_v33  ;;  %773 = vmatpush.bf16.msrb.mxu0 %v1244_v42 }
  0x71   : > { %792 = vmatpush.bf16.msrb.mxu1 %v1308_v45  ;;  %953 = vmatpush.bf16.msrb.mxu2 %v1466_v28 }
  0x72   : > { %972 = vmatpush.bf16.msrb.mxu3 %v1474_v27 }
  0x74   : > { %774 = vmatpush.bf16.msrb.mxu0 %v1236_v56  ;;  %v1472_v56 = vld [vmem:[#allocation10 + $0x58] sm:$0xff] }
  0x75   : > { %793 = vmatpush.bf16.msrb.mxu1 %v1300_v57  ;;  %v1465_v57 = vld [vmem:[#allocation10 + $0x20] sm:$0xff] }
  0x76   : > { %973 = vmatpush.bf16.msrb.mxu3 %v1473_v35  ;;  %954 = vmatpush.bf16.msrb.mxu2 %v1465_v57 }
  0x78   : > { %775 = vmatpush.bf16.msrb.mxu0 %v1228_v2 }
  0x79   : > { %794 = vmatpush.bf16.msrb.mxu1 %v1292_v5 }
  0x7a   : > { %974 = vmatpush.bf16.msrb.mxu3 %v1472_v56  ;;  %955 = vmatpush.bf16.msrb.mxu2 %v1464_v59 }
  0x7c   : > { %776 = vmatpush.bf16.msrb.mxu0 %v1220_v14 }
  0x7d   : > { %795 = vmatpush.bf16.msrb.mxu1 %v1284_v17 }
  0x7e   : > { %975 = vmatpush.bf16.msrb.mxu3 %v1471_v58  ;;  %956 = vmatpush.bf16.msrb.mxu2 %v1463_v61 }
  0x82   : > { %976 = vmatpush.bf16.msrb.mxu3 %v1470_v60  ;;  %957 = vmatpush.bf16.msrb.mxu2 %v1462_v63 }
  0x86   : > { %977 = vmatpush.bf16.msrb.mxu3 %v1469_v62  ;;  %958 = vmatpush.bf16.msrb.mxu2 %v1461_v0 }
  0xdc   : > { %v492_v19 = vpop.f32.mrf.mxu0 }
  0xdd   : > { %v511_v22 = vpop.f32.mrf.mxu1  ;;  %v493_v29 = vadd.f32 %v492_v19, %v387_v25 }
  0xde   : > { %v512_v30 = vadd.f32 %v511_v22, %v388_v26 }
  0xdf   : > { %v521_v36 = vmax.f32 %v493_v29, 0.0 }
  0xe0   : > { %v522_v38 = vmax.f32 %v512_v30, 0.0 }
  0xe4   : > { %v494_v31 = vpop.f32.mrf.mxu0 }
  0xe5   : > { %v495_v32 = vadd.f32 %v494_v31, %v387_v25  ;;  %v513_v33 = vpop.f32.mrf.mxu1 }
  0xe6   : > { %v514_v34 = vadd.f32 %v513_v33, %v388_v26 }
  0xe7   : > { %v523_v37 = vmax.f32 %v495_v32, 0.0 }
  0xe8   : > { %v524_v39 = vmax.f32 %v514_v34, 0.0 }
  0xe9   : > { %v529_v40 = vpack.c.bf16 %v523_v37, %v521_v36 }
  0xea   : > { %v530_v41 = vpack.c.bf16 %v524_v39, %v522_v38 }
  0xeb   : > { %739 = vmatmul.bf16.vlgmr.msra.gmra.mxu2 %v529_v40  ;;  %777 = vmatmul.bf16.vlgmr.msrb.gmra.mxu0 %v529_v40 }
  0xec   : > { %758 = vmatmul.bf16.vlgmr.msra.gmra.mxu3 %v530_v41  ;;  %796 = vmatmul.bf16.vlgmr.msrb.gmra.mxu1 %v530_v41  ;;  %v497_v42 = vpop.f32.mrf.mxu0 }
  0xed   : > { %v516_v43 = vpop.f32.mrf.mxu1  ;;  %v498_v44 = vadd.f32 %v497_v42, %v387_v25 }
  0xee   : > { %v517_v45 = vadd.f32 %v516_v43, %v388_v26 }
  0xef   : > { %v525_v50 = vmax.f32 %v498_v44, 0.0 }
  0xf0   : > { %v526_v52 = vmax.f32 %v517_v45, 0.0 }
  0xf4   : > { %v499_v46 = vpop.f32.mrf.mxu0 }
  0xf5   : > { %v500_v47 = vadd.f32 %v499_v46, %v387_v25  ;;  %v518_v48 = vpop.f32.mrf.mxu1 }
  0xf6   : > { %v519_v49 = vadd.f32 %v518_v48, %v388_v26 }
  0xf7   : > { %v527_v51 = vmax.f32 %v500_v47, 0.0 }
  0xf8   : > { %v528_v53 = vmax.f32 %v519_v49, 0.0 }
  0xf9   : > { %v531_v54 = vpack.c.bf16 %v527_v51, %v525_v50  ;;  %v1582_v50 = vld [vmem:[%s2046_s6] ss:$0 sm:$0xff] }
  0xfa   : > { %v532_v55 = vpack.c.bf16 %v528_v53, %v526_v52 }
  0xfb   : > { %744 = vmatmul.bf16.gmra.mxu2 %v531_v54  ;;  %782 = vmatmul.bf16.gmra.mxu0 %v531_v54 }
  0xfc   : > { %763 = vmatmul.bf16.gmra.mxu3 %v532_v55  ;;  %801 = vmatmul.bf16.gmra.mxu1 %v532_v55 }
 0x168   : > { %v778_v2 = vpop.f32.mrf.mxu0 }
 0x169   : > { %v797_v4 = vpop.f32.mrf.mxu1  ;;  %v779_v5 = vadd.f32 %v778_v2, %v568_v3 }
 0x16b   : > { %v798_v10 = vadd.f32 %v797_v4, %v779_v5 }
 0x16d   : > { %v808_v15 = vmax.f32 %v798_v10, 0.0 }
 0x16e   : > { %v740_v6 = vpop.f32.mrf.mxu2 }
 0x16f   : > { %v759_v8 = vpop.f32.mrf.mxu3  ;;  %v741_v13 = vadd.f32 %v740_v6, %v567_v7 }
 0x170   : > { %v780_v9 = vpop.f32.mrf.mxu0 }
 0x171   : > { %v781_v11 = vadd.f32 %v780_v9, %v568_v3  ;;  %v799_v12 = vpop.f32.mrf.mxu1  ;;  %v760_v18 = vadd.f32 %v759_v8, %v741_v13 }
 0x173   : > { %v800_v14 = vadd.f32 %v799_v12, %v781_v11  ;;  %v807_v25 = vmax.f32 %v760_v18, 0.0 }
 0x175   : > { %v810_v16 = vmax.f32 %v800_v14, 0.0 }
 0x176   : > { %v742_v17 = vpop.f32.mrf.mxu2 }
 0x177   : > { %v816_v19 = vpack.c.bf16 %v810_v16, %v808_v15  ;;  %v743_v20 = vadd.f32 %v742_v17, %v567_v7  ;;  %v761_v21 = vpop.f32.mrf.mxu3 }
 0x178   : > { %v783_v22 = vpop.f32.mrf.mxu0 }
 0x179   : > { %v762_v23 = vadd.f32 %v761_v21, %v743_v20  ;;  %v802_v24 = vpop.f32.mrf.mxu1  ;;  %978 = vmatmul.bf16.vlgmr.msrb.gmra.mxu3 %v816_v19  ;;  %v784_v28 = vadd.f32 %v783_v22, %v568_v3 }
 0x17b   : > { %v809_v26 = vmax.f32 %v762_v23, 0.0  ;;  %v803_v32 = vadd.f32 %v802_v24, %v784_v28 }
 0x17d   : > { %v815_v27 = vpack.c.bf16 %v809_v26, %v807_v25  ;;  %v812_v37 = vmax.f32 %v803_v32, 0.0 }
 0x17e   : > { %v745_v29 = vpop.f32.mrf.mxu2 }
 0x17f   : > { %v764_v30 = vpop.f32.mrf.mxu3  ;;  %959 = vmatmul.bf16.vlgmr.msrb.gmra.mxu2 %v815_v27  ;;  %v746_v35 = vadd.f32 %v745_v29, %v567_v7 }
 0x180   : > { %v785_v31 = vpop.f32.mrf.mxu0 }
 0x181   : > { %v786_v33 = vadd.f32 %v785_v31, %v568_v3  ;;  %v804_v34 = vpop.f32.mrf.mxu1  ;;  %v765_v40 = vadd.f32 %v764_v30, %v746_v35 }
 0x183   : > { %v805_v36 = vadd.f32 %v804_v34, %v786_v33  ;;  %v811_v45 = vmax.f32 %v765_v40, 0.0 }
 0x185   : > { %v814_v38 = vmax.f32 %v805_v36, 0.0 }
 0x186   : > { %v747_v39 = vpop.f32.mrf.mxu2 }
 0x187   : > { %v748_v41 = vadd.f32 %v747_v39, %v567_v7  ;;  %v818_v42 = vpack.c.bf16 %v814_v38, %v812_v37  ;;  %v766_v43 = vpop.f32.mrf.mxu3 }
 0x189   : > { %v767_v44 = vadd.f32 %v766_v43, %v748_v41  ;;  %983 = vmatmul.bf16.gmra.mxu3 %v818_v42 }
 0x18b   : > { %v813_v46 = vmax.f32 %v767_v44, 0.0 }
 0x18d   : > { %v817_v47 = vpack.c.bf16 %v813_v46, %v811_v45 }
 0x18f   : > { %964 = vmatmul.bf16.gmra.mxu2 %v817_v47 }
 0x1fc   : > { %v979_v48 = vpop.f32.mrf.mxu3 }
 0x202   : > { %v960_v49 = vpop.f32.mrf.mxu2 }
 0x203   : > { %v961_v52 = vadd.f32 %v1582_v50, %v960_v49 }
 0x204   : > { %v981_v51 = vpop.f32.mrf.mxu3 }
 0x205   : > { %v980_v55 = vadd.f32 %v979_v48, %v961_v52 }
 0x20a   : > { %v962_v53 = vpop.f32.mrf.mxu2 }
 0x20b   : > { %v963_v54 = vadd.f32 %v1582_v50, %v962_v53 }
 0x20c   : > { %v984_v58 = vpop.f32.mrf.mxu3 }
 0x20d   : > { %v982_v56 = vadd.f32 %v981_v51, %v963_v54 }
 0x20f   : > { %v1481_v57 = vpack.c.bf16 %v982_v56, %v980_v55 }
 0x211   : > { %1482 = vst [vmem:[%s362_s22] sm:$0xff] %v1481_v57  }
 0x212   : > { %v965_v59 = vpop.f32.mrf.mxu2 }
 0x213   : > { %v966_v60 = vadd.f32 %v1582_v50, %v965_v59 }
 0x214   : > { %v986_v63 = vpop.f32.mrf.mxu3 }
 0x215   : > { %v985_v0 = vadd.f32 %v984_v58, %v966_v60 }
 0x21a   : > { %v967_v61 = vpop.f32.mrf.mxu2 }
 0x21b   : > { %v968_v62 = vadd.f32 %v1582_v50, %v967_v61 }
 0x21d   : > { %v987_v1 = vadd.f32 %v986_v63, %v968_v62 }
 0x21f   : > { %v1486_v2 = vpack.c.bf16 %v987_v1, %v985_v0 }
 0x221   : > { %1488 = vst [vmem:[%s362_s22 + $0x8] sm:$0xff] %v1486_v2  }
 0x222   : > { %1760 = shalt.err (!%p1757_p10)
}
 0x223   : > { %s1817_s13 = smov 64   ;;  %s1818_s22 = smov 4  }
 0x224   : > { %1507 = dma.vmem_to_hbm [thread:$0]  (%p1948_p3), %s1011_s15, 256, %s1013_s17, %s998_s1, %s1817_s13, %s1817_s13, %s1818_s22  }
 0x225 PF: > { %p1539_p11 = scmp.ge.s32.totalorder %s1807_s27, 2  ;;  %s1027_s23 = sand.u32 1, %s1795_s24  }
 0x226   : > { %s1028_s16 = scalar_lea.sflag [#allocation4], %s1027_s23 }
 0x227   : > { %p1527_p12 = pnand %p1539_p11, %p1894_p6 }
 0x229   : > { %p1528_p13 = pneg %p1527_p12 }
 0x22b   : > { %1790 = dma.done.wait (%p1528_p13), %s1028_s16, 256  }
 0x22c   : > { %1792 = vsyncadd (%p1528_p13), %s1028_s16, 4294967040  ;;  %p22_p0 = scmp.ge.s32.totalorder %s1935_s21, 10   ;;  %s2060_s24 = smov %s1799_s25 }
 0x22d   : > { %s2061_s25 = smov %s1803_s26  ;;  %s2062_s26 = smov %s1944_s29 }
 0x22e   : > { %s2063_s27 = smov %s1935_s21  ;;  %24 = sbr.rel (!%p22_p0) target bundleno = 9 (0x9), region = 109 }
 0x233   :  { %1034 = vsyncpa [#allocation3], 1 }
 0x234   :  { %1036 = vsyncpa [#allocation3 + $0x1], 1 }
 0x235   :  { %1037 = vsyncpa [#allocation6], 1 }
 0x236   :  { %1038 = vsyncpa [#allocation9], 1 }
 0x237   :  { %1039 = vsyncpa [#allocation4], 1 }
 0x238   :  { %1041 = vsyncpa [#allocation4 + $0x1], 1 }

</bundles_post_ra>
